<compile_context>
chip_gen: v7x
topology: tpu7x:2x2x1
jax: 0.10.0
libtpu: 0.0.40
codegen_flags: <defaults>
</compile_context>

<pallas_src>
import jax
import jax.numpy as jnp
from jax.experimental import pallas as pl
from jax.experimental.pallas import tpu as pltpu


def _round_up(n: int, m: int) -> int:
    return ((n + m - 1) // m) * m


def _sublane(dtype) -> int:
    # dtype-native sublane multiple: 8 for 4-byte, 16 for 2-byte, 32 for 1-byte.
    return {4: 8, 2: 16, 1: 32}.get(jnp.dtype(dtype).itemsize, 8)


def _vmem_capacity_bytes(default: int = 64 << 20) -> int:
    # Capability probe only (falls back to the most conservative generation).
    try:
        cap = getattr(pltpu.get_tpu_info(), "vmem_capacity_bytes", None)
        if cap:
            return int(cap)
    except Exception:
        pass
    return default


def _pick_vocab_tile(voc: int, target: int) -> int:
    """Largest lane-aligned vocab tile <= target that divides voc (else voc)."""
    if voc <= max(target, 128):
        return voc
    t = (min(target, voc) // 128) * 128
    while t >= 128:
        if voc % t == 0:
            return t
        t -= 128
    return voc


def projection_kernel(x_ref, w1_ref, b1_ref, w2_ref, b2_ref, o_ref,
                      h_ref, m_ref, l_ref, lse_ref):
    # Grid: (row_tiles, pass, vocab_tiles)
    #   pass 0: online logsumexp over vocab tiles (running m, l in scratch)
    #   pass 1: recompute each logits tile and write logits - lse
    p = pl.program_id(1)
    k = pl.program_id(2)

    @pl.when(jnp.logical_and(p == 0, k == 0))
    def _():
        # First matmul once per row tile; f32 accumulation, stored in the
        # MXU-native compute dtype for the second matmul.
        h = jnp.dot(x_ref[...], w1_ref[...], preferred_element_type=jnp.float32)
        h = h + b1_ref[...].astype(jnp.float32)
        h_ref[...] = h.astype(h_ref.dtype)
        m_ref[...] = jnp.full_like(m_ref, -jnp.inf)
        l_ref[...] = jnp.zeros_like(l_ref)

    # (tm, tv) logits tile for this vocab tile (needed in both passes).
    logits = jnp.dot(h_ref[...], w2_ref[...], preferred_element_type=jnp.float32)
    logits = logits + b2_ref[...].astype(jnp.float32)

    @pl.when(p == 0)
    def _():
        m_prev = m_ref[...]
        m_new = jnp.maximum(m_prev, jnp.max(logits, axis=-1, keepdims=True))
        l_ref[...] = (l_ref[...] * jnp.exp(m_prev - m_new)
                      + jnp.sum(jnp.exp(logits - m_new), axis=-1, keepdims=True))
        m_ref[...] = m_new

    @pl.when(jnp.logical_and(p == 1, k == 0))
    def _():
        lse_ref[...] = m_ref[...] + jnp.log(l_ref[...])

    @pl.when(p == 1)
    def _():
        # Fused epilogue: write log-probs directly (no extra f32 temporary).
        o_ref[...] = (logits - lse_ref[...]).astype(o_ref.dtype)


def prepare_projection_params(w1, b1, w2, b2, compute_dtype=jnp.bfloat16):
    """One-time (init-time) layout/dtype prep.

    nn.Linear stores weight as (out, in); transpose to (in, out) ONCE and cast
    to the MXU compute dtype (bf16 by default; accumulation stays f32 in the
    kernel).  Biases stay f32.
    """
    return (w1.T.astype(compute_dtype), b1.reshape(1, -1).astype(jnp.float32),
            w2.T.astype(compute_dtype), b2.reshape(1, -1).astype(jnp.float32))


def projection_layer(x, w1t, b1r, w2t, b2r, *, tm=512, tv=2048, out_dtype=None):
    """x: (batch, seq, d_model); w1t: (d_model, d_model) (in,out) layout;
    b1r: (1, d_model) f32; w2t: (d_model, voc) (in,out) layout; b2r: (1, voc) f32.
    Returns log-probs of shape (batch, seq, voc)."""
    batch, seq, d_model = x.shape
    voc = w2t.shape[1]
    out_dtype = out_dtype if out_dtype is not None else x.dtype

    rows = batch * seq
    # Feed the MXU matched-dtype operands (bf16 stays bf16, f32 stays f32).
    x2d = x.reshape(rows, d_model).astype(w1t.dtype)

    # --- row tile -----------------------------------------------------------
    sub = _sublane(x2d.dtype)
    tm_eff = min(_round_up(tm, sub), _round_up(rows, sub))
    # v7x megacore: prefer >= 2 row-tile steps so both TensorCores get work.
    if rows > sub and -(-rows // tm_eff) < 2:
        tm_eff = _round_up(-(-rows // 2), sub)

    # --- vocab tile ----------------------------------------------------------
    tv_eff = _pick_vocab_tile(voc, tv)

    # --- VMEM budget (generation-aware, honest estimate + headroom) ----------
    cap = _vmem_capacity_bytes()
    budget = int(cap * 0.85)          # leave room for Mosaic internal scratch

    ci = jnp.dtype(w1t.dtype).itemsize
    xi = jnp.dtype(x2d.dtype).itemsize
    oi = jnp.dtype(out_dtype).itemsize

    def vmem_need(tm_, tv_):
        d = d_model
        return (2 * tm_ * d * xi            # x tile, double buffered
                + 2 * d * d * ci            # W1 (resident)
                + 2 * d * 4                 # b1
                + 2 * d * tv_ * ci          # W2 vocab tile, double buffered
                + 2 * tv_ * 4               # b2 tile
                + 2 * tm_ * tv_ * oi        # out tile, double buffered
                + tm_ * d * ci              # h scratch
                + 3 * tm_ * 128 * 4         # m/l/lse scratch (lane padded)
                + 2 * tm_ * tv_ * 4)        # f32 logits live values

    while tm_eff > sub and vmem_need(tm_eff, tv_eff) > budget:
        tm_eff = max(sub, _round_up(tm_eff // 2, sub))
    while tv_eff > 128 and vmem_need(tm_eff, tv_eff) > budget:
        nt = ((tv_eff // 2) // 128) * 128
        if nt < 128 or voc % nt != 0:
            break
        tv_eff = nt

    n_vt = voc // tv_eff
    rows_p = _round_up(rows, tm_eff)
    if rows_p != rows:
        x2d = jnp.pad(x2d, ((0, rows_p - rows), (0, 0)))
    n_rt = rows_p // tm_eff

    vmem_limit = int(min(budget, max(vmem_need(tm_eff, tv_eff) + (8 << 20),
                                     32 << 20)))

    # --- advisory cost estimate ----------------------------------------------
    in_bytes = (x2d.size * xi + w1t.size * ci + w2t.size * ci
                + b1r.size * 4 + b2r.size * 4)
    out_bytes = rows_p * voc * oi
    cost = pl.CostEstimate(
        flops=2 * rows_p * d_model * d_model + 2 * (2 * rows_p * d_model * voc),
        transcendentals=rows_p * voc + rows_p,   # exp (pass 0) + per-row log
        bytes_accessed=in_bytes + out_bytes,
    )

    out2d = pl.pallas_call(
        projection_kernel,
        out_shape=jax.ShapeDtypeStruct((rows_p, voc), out_dtype),
        grid_spec=pltpu.PrefetchScalarGridSpec(
            num_scalar_prefetch=0,
            grid=(n_rt, 2, n_vt),
            in_specs=[
                pl.BlockSpec((tm_eff, d_model), lambda i, p, k: (i, 0)),
                pl.BlockSpec((d_model, d_model), lambda i, p, k: (0, 0)),
                pl.BlockSpec((1, d_model), lambda i, p, k: (0, 0)),
                pl.BlockSpec((d_model, tv_eff), lambda i, p, k: (0, k)),
                pl.BlockSpec((1, tv_eff), lambda i, p, k: (0, k)),
            ],
            # During pass 0 the output block index stays at (i, 0) (never
            # written); during pass 1 it walks the vocab tiles, so each block
            # is written exactly once right before its writeback.
            out_specs=pl.BlockSpec((tm_eff, tv_eff), lambda i, p, k: (i, k * p)),
            scratch_shapes=[
                pltpu.VMEM((tm_eff, d_model), w2t.dtype),   # h
                pltpu.VMEM((tm_eff, 1), jnp.float32),       # running max m
                pltpu.VMEM((tm_eff, 1), jnp.float32),       # running sum l
                pltpu.VMEM((tm_eff, 1), jnp.float32),       # lse
            ],
        ),
        compiler_params=pltpu.CompilerParams(
            dimension_semantics=("parallel", "arbitrary", "arbitrary"),
            vmem_limit_bytes=vmem_limit,
        ),
        cost_estimate=cost,
    )(x2d, w1t, b1r, w2t, b2r)

    if rows_p != rows:
        out2d = out2d[:rows]
    return out2d.reshape(batch, seq, voc)


def projection_ref(x, w1, b1, w2, b2):
    # Pure-JAX reference using the original nn.Linear (out, in) weight layout.
    h = jnp.einsum("bsd,ed->bse", x, w1) + b1
    logits = jnp.einsum("bsd,vd->bsv", h, w2) + b2
    return jax.nn.log_softmax(logits, axis=-1)


if __name__ == "__main__":
    batch, seq, d_model, voc_size = 2, 8, 32, 128

    key = jax.random.PRNGKey(0)
    kx, k1, k2, k3, k4 = jax.random.split(key, 5)

    # nn.Linear-style params: weight (out, in), bias (out,).
    bound1 = 1.0 / (d_model ** 0.5)
    w1 = jax.random.uniform(k1, (d_model, d_model), jnp.float32, -bound1, bound1)
    b1 = jax.random.uniform(k2, (d_model,), jnp.float32, -bound1, bound1)
    w2 = jax.random.uniform(k3, (voc_size, d_model), jnp.float32, -bound1, bound1)
    b2 = jax.random.uniform(k4, (voc_size,), jnp.float32, -bound1, bound1)

    x = jax.random.normal(kx, (batch, seq, d_model), jnp.float32)
    ref = projection_ref(x, w1, b1, w2, b2)

    # --- strict f32 path (matches the PyTorch module numerically) ------------
    params_f32 = jax.block_until_ready(
        prepare_projection_params(w1, b1, w2, b2, compute_dtype=jnp.float32))
    out_f32 = jax.block_until_ready(projection_layer(x, *params_f32))
    assert out_f32.shape == (batch, seq, voc_size)
    assert jnp.allclose(out_f32, ref, atol=1e-5, rtol=1e-5)

    # --- bf16-weight path (per perf feedback: bf16 MXU operands, f32 accum) --
    params_bf16 = jax.block_until_ready(
        prepare_projection_params(w1, b1, w2, b2, compute_dtype=jnp.bfloat16))
    out_bf16 = jax.block_until_ready(projection_layer(x, *params_bf16))
    assert out_bf16.shape == (batch, seq, voc_size)
    assert jnp.allclose(out_bf16, ref, atol=5e-2, rtol=5e-2)

    print("KERNEL_OK")
</pallas_src>

<mosaic_0001>
module attributes {stable_mosaic.version = 11 : i64} {
  func.func @projection_kernel(%arg0: i32, %arg1: i32, %arg2: i32, %arg3: memref<8x32xf32, #tpu.memory_space<vmem>>, %arg4: memref<32x32xf32, #tpu.memory_space<vmem>>, %arg5: memref<1x32xf32, #tpu.memory_space<vmem>>, %arg6: memref<32x128xf32, #tpu.memory_space<vmem>>, %arg7: memref<1x128xf32, #tpu.memory_space<vmem>>, %arg8: memref<8x128xf32, #tpu.memory_space<vmem>>, %arg9: memref<8x32xf32, #tpu.memory_space<vmem>>, %arg10: memref<8x1xf32, #tpu.memory_space<vmem>>, %arg11: memref<8x1xf32, #tpu.memory_space<vmem>>, %arg12: memref<8x1xf32, #tpu.memory_space<vmem>>) attributes {dimension_semantics = [#tpu.dimension_semantics<parallel>, #tpu.dimension_semantics<arbitrary>, #tpu.dimension_semantics<arbitrary>], iteration_bounds = array<i64: 2, 2, 1>, scalar_prefetch = 0 : i64, scratch_operands = 4 : i64, tpu.core_type = #tpu.core_type<tc>, window_params = [{transform_indices = @transform_0, window_bounds = array<i64: 8, 32>}, {pipeline_mode = #tpu.pipeline_mode<synchronous>, transform_indices = @transform_1, window_bounds = array<i64: 32, 32>}, {pipeline_mode = #tpu.pipeline_mode<synchronous>, transform_indices = @transform_2, window_bounds = array<i64: 1, 32>}, {transform_indices = @transform_3, window_bounds = array<i64: 32, 128>}, {transform_indices = @transform_4, window_bounds = array<i64: 1, 128>}, {transform_indices = @transform_5, window_bounds = array<i64: 8, 128>}]} {
    %c0_i32 = arith.constant 0 : i32
    %0 = arith.cmpi eq, %arg1, %c0_i32 : i32
    %c0_i32_0 = arith.constant 0 : i32
    %1 = arith.cmpi eq, %arg2, %c0_i32_0 : i32
    %2 = arith.andi %0, %1 : i1
    %3 = arith.extui %2 : i1 to i32
    %c0_i32_1 = arith.constant 0 : i32
    %4 = arith.cmpi ne, %3, %c0_i32_1 : i32
    scf.if %4 {
      %c0_13 = arith.constant 0 : index
      %c0_14 = arith.constant 0 : index
      %22 = vector.load %arg3[%c0_13, %c0_14] : memref<8x32xf32, #tpu.memory_space<vmem>>, vector<8x32xf32>
      %c0_15 = arith.constant 0 : index
      %c0_16 = arith.constant 0 : index
      %23 = vector.load %arg4[%c0_15, %c0_16] : memref<32x32xf32, #tpu.memory_space<vmem>>, vector<32x32xf32>
      %cst_17 = arith.constant dense<0.000000e+00> : vector<8x32xf32>
      %24 = tpu.matmul %22, %23, %cst_17 {dimension_numbers = #tpu.dot_dimension_numbers<[1], [0], [0], [1], [0, 0, 1, 1], [], []>} : vector<8x32xf32>, vector<32x32xf32>, vector<8x32xf32> -> vector<8x32xf32>
      %c0_18 = arith.constant 0 : index
      %c0_19 = arith.constant 0 : index
      %25 = vector.load %arg5[%c0_18, %c0_19] : memref<1x32xf32, #tpu.memory_space<vmem>>, vector<1x32xf32>
      %26 = vector.broadcast %25 : vector<1x32xf32> to vector<8x32xf32>
      %27 = arith.addf %24, %26 : vector<8x32xf32>
      %c0_20 = arith.constant 0 : index
      %c0_21 = arith.constant 0 : index
      %28 = vector.load %arg9[%c0_20, %c0_21] : memref<8x32xf32, #tpu.memory_space<vmem>>, vector<8x32xf32>
      tpu.vector_store %arg9[%c0_20, %c0_21], %27 {strides = array<i32>} : memref<8x32xf32, #tpu.memory_space<vmem>>, vector<8x32xf32>,
      %cst_22 = arith.constant 0xFF800000 : f32
      %29 = vector.broadcast %cst_22 : f32 to vector<8x1xf32>
      %c0_23 = arith.constant 0 : index
      %c0_24 = arith.constant 0 : index
      %30 = vector.load %arg10[%c0_23, %c0_24] : memref<8x1xf32, #tpu.memory_space<vmem>>, vector<8x1xf32>
      tpu.vector_store %arg10[%c0_23, %c0_24], %29 {strides = array<i32>} : memref<8x1xf32, #tpu.memory_space<vmem>>, vector<8x1xf32>,
      %cst_25 = arith.constant 0.000000e+00 : f32
      %31 = vector.broadcast %cst_25 : f32 to vector<8x1xf32>
      %c0_26 = arith.constant 0 : index
      %c0_27 = arith.constant 0 : index
      %32 = vector.load %arg11[%c0_26, %c0_27] : memref<8x1xf32, #tpu.memory_space<vmem>>, vector<8x1xf32>
      tpu.vector_store %arg11[%c0_26, %c0_27], %31 {strides = array<i32>} : memref<8x1xf32, #tpu.memory_space<vmem>>, vector<8x1xf32>,
    } else {
    }
    %c0 = arith.constant 0 : index
    %c0_2 = arith.constant 0 : index
    %5 = vector.load %arg9[%c0, %c0_2] : memref<8x32xf32, #tpu.memory_space<vmem>>, vector<8x32xf32>
    %c0_3 = arith.constant 0 : index
    %c0_4 = arith.constant 0 : index
    %6 = vector.load %arg6[%c0_3, %c0_4] : memref<32x128xf32, #tpu.memory_space<vmem>>, vector<32x128xf32>
    %cst = arith.constant dense<0.000000e+00> : vector<8x128xf32>
    %7 = tpu.matmul %5, %6, %cst {dimension_numbers = #tpu.dot_dimension_numbers<[1], [0], [0], [1], [0, 0, 1, 1], [], []>} : vector<8x32xf32>, vector<32x128xf32>, vector<8x128xf32> -> vector<8x128xf32>
    %c0_5 = arith.constant 0 : index
    %c0_6 = arith.constant 0 : index
    %8 = vector.load %arg7[%c0_5, %c0_6] : memref<1x128xf32, #tpu.memory_space<vmem>>, vector<1x128xf32>
    %9 = vector.broadcast %8 : vector<1x128xf32> to vector<8x128xf32>
    %10 = arith.addf %7, %9 : vector<8x128xf32>
    %c0_i32_7 = arith.constant 0 : i32
    %11 = arith.cmpi eq, %arg1, %c0_i32_7 : i32
    %12 = arith.extui %11 : i1 to i32
    %c0_i32_8 = arith.constant 0 : i32
    %13 = arith.cmpi ne, %12, %c0_i32_8 : i32
    scf.if %13 {
      %c0_13 = arith.constant 0 : index
      %c0_14 = arith.constant 0 : index
      %22 = vector.load %arg10[%c0_13, %c0_14] : memref<8x1xf32, #tpu.memory_space<vmem>>, vector<8x1xf32>
      %cst_15 = arith.constant dense<0xFF800000> : vector<8xf32>
      %23 = vector.multi_reduction <maximumf>, %10, %cst_15 [1] : vector<8x128xf32> to vector<8xf32>
      %24 = vector.shape_cast %23 : vector<8xf32> to vector<8x1xf32>
      %25 = arith.maximumf %22, %24 : vector<8x1xf32>
      %c0_16 = arith.constant 0 : index
      %c0_17 = arith.constant 0 : index
      %26 = vector.load %arg11[%c0_16, %c0_17] : memref<8x1xf32, #tpu.memory_space<vmem>>, vector<8x1xf32>
      %27 = arith.subf %22, %25 : vector<8x1xf32>
      %28 = math.exp %27 : vector<8x1xf32>
      %29 = arith.mulf %26, %28 : vector<8x1xf32>
      %30 = vector.broadcast %25 : vector<8x1xf32> to vector<8x128xf32>
      %31 = arith.subf %10, %30 : vector<8x128xf32>
      %32 = math.exp %31 : vector<8x128xf32>
      %cst_18 = arith.constant dense<0.000000e+00> : vector<8xf32>
      %33 = vector.multi_reduction <add>, %32, %cst_18 [1] : vector<8x128xf32> to vector<8xf32>
      %34 = vector.shape_cast %33 : vector<8xf32> to vector<8x1xf32>
      %35 = arith.addf %29, %34 : vector<8x1xf32>
      %c0_19 = arith.constant 0 : index
      %c0_20 = arith.constant 0 : index
      %36 = vector.load %arg11[%c0_19, %c0_20] : memref<8x1xf32, #tpu.memory_space<vmem>>, vector<8x1xf32>
      tpu.vector_store %arg11[%c0_19, %c0_20], %35 {strides = array<i32>} : memref<8x1xf32, #tpu.memory_space<vmem>>, vector<8x1xf32>,
      %c0_21 = arith.constant 0 : index
      %c0_22 = arith.constant 0 : index
      %37 = vector.load %arg10[%c0_21, %c0_22] : memref<8x1xf32, #tpu.memory_space<vmem>>, vector<8x1xf32>
      tpu.vector_store %arg10[%c0_21, %c0_22], %25 {strides = array<i32>} : memref<8x1xf32, #tpu.memory_space<vmem>>, vector<8x1xf32>,
    } else {
    }
    %c1_i32 = arith.constant 1 : i32
    %14 = arith.cmpi eq, %arg1, %c1_i32 : i32
    %c0_i32_9 = arith.constant 0 : i32
    %15 = arith.cmpi eq, %arg2, %c0_i32_9 : i32
    %16 = arith.andi %14, %15 : i1
    %17 = arith.extui %16 : i1 to i32
    %c0_i32_10 = arith.constant 0 : i32
    %18 = arith.cmpi ne, %17, %c0_i32_10 : i32
    scf.if %18 {
      %c0_13 = arith.constant 0 : index
      %c0_14 = arith.constant 0 : index
      %22 = vector.load %arg10[%c0_13, %c0_14] : memref<8x1xf32, #tpu.memory_space<vmem>>, vector<8x1xf32>
      %c0_15 = arith.constant 0 : index
      %c0_16 = arith.constant 0 : index
      %23 = vector.load %arg11[%c0_15, %c0_16] : memref<8x1xf32, #tpu.memory_space<vmem>>, vector<8x1xf32>
      %24 = math.log %23 : vector<8x1xf32>
      %25 = arith.addf %22, %24 : vector<8x1xf32>
      %c0_17 = arith.constant 0 : index
      %c0_18 = arith.constant 0 : index
      %26 = vector.load %arg12[%c0_17, %c0_18] : memref<8x1xf32, #tpu.memory_space<vmem>>, vector<8x1xf32>
      tpu.vector_store %arg12[%c0_17, %c0_18], %25 {strides = array<i32>} : memref<8x1xf32, #tpu.memory_space<vmem>>, vector<8x1xf32>,
    } else {
    }
    %c1_i32_11 = arith.constant 1 : i32
    %19 = arith.cmpi eq, %arg1, %c1_i32_11 : i32
    %20 = arith.extui %19 : i1 to i32
    %c0_i32_12 = arith.constant 0 : i32
    %21 = arith.cmpi ne, %20, %c0_i32_12 : i32
    scf.if %21 {
      %c0_13 = arith.constant 0 : index
      %c0_14 = arith.constant 0 : index
      %22 = vector.load %arg12[%c0_13, %c0_14] : memref<8x1xf32, #tpu.memory_space<vmem>>, vector<8x1xf32>
      %23 = vector.broadcast %22 : vector<8x1xf32> to vector<8x128xf32>
      %24 = arith.subf %10, %23 : vector<8x128xf32>
      %c0_15 = arith.constant 0 : index
      %c0_16 = arith.constant 0 : index
      %25 = vector.load %arg8[%c0_15, %c0_16] : memref<8x128xf32, #tpu.memory_space<vmem>>, vector<8x128xf32>
      tpu.vector_store %arg8[%c0_15, %c0_16], %24 {strides = array<i32>} : memref<8x128xf32, #tpu.memory_space<vmem>>, vector<8x128xf32>,
    } else {
    }
    return
  }
  func.func @transform_0(%arg0: i32, %arg1: i32, %arg2: i32) -> (i32, i32) {
    %c0_i32 = arith.constant 0 : i32
    %c0_i32_0 = arith.constant 0 : i32
    return %arg0, %c0_i32 : i32, i32
  }
  func.func @transform_1(%arg0: i32, %arg1: i32, %arg2: i32) -> (i32, i32) {
    %c0_i32 = arith.constant 0 : i32
    %c0_i32_0 = arith.constant 0 : i32
    %c0_i32_1 = arith.constant 0 : i32
    return %c0_i32, %c0_i32_0 : i32, i32
  }
  func.func @transform_2(%arg0: i32, %arg1: i32, %arg2: i32) -> (i32, i32) {
    %c0_i32 = arith.constant 0 : i32
    %c0_i32_0 = arith.constant 0 : i32
    %c0_i32_1 = arith.constant 0 : i32
    return %c0_i32, %c0_i32_0 : i32, i32
  }
  func.func @transform_3(%arg0: i32, %arg1: i32, %arg2: i32) -> (i32, i32) {
    %c0_i32 = arith.constant 0 : i32
    %c0_i32_0 = arith.constant 0 : i32
    return %c0_i32, %arg2 : i32, i32
  }
  func.func @transform_4(%arg0: i32, %arg1: i32, %arg2: i32) -> (i32, i32) {
    %c0_i32 = arith.constant 0 : i32
    %c0_i32_0 = arith.constant 0 : i32
    return %c0_i32, %arg2 : i32, i32
  }
  func.func @transform_5(%arg0: i32, %arg1: i32, %arg2: i32) -> (i32, i32) {
    %0 = arith.muli %arg2, %arg1 : i32
    %c0_i32 = arith.constant 0 : i32
    return %arg0, %0 : i32, i32
  }
}

</mosaic_0001>

<bundles_post_ra>
// kernel: tpu_custom_call.1
= control target key start
LH: loop header
LB: loop body
LE: loop exit
PB: predicated region body
PF: predicated region fallthrough
CT: control target
= control target key end

     0   :  { %s1379_s0 = inlined_call_operand.hbm [shape: f32[16,32], index: 0, kind: input, shape index: {}]   ;;  %s1380_s1 = inlined_call_operand.hbm [shape: f32[32,32], index: 1, kind: input, shape index: {}]   ;;  %s1381_s2 = inlined_call_operand.vmem [shape: f32[1,32], index: 2, kind: input, shape index: {}]   ;;  %s1382_s3 = inlined_call_operand.hbm [shape: f32[32,128], index: 3, kind: input, shape index: {}]   ;;  %s1383_s4 = inlined_call_operand.vmem [shape: f32[1,128], index: 4, kind: input, shape index: {}]   ;;  %s1384_s5 = inlined_call_operand.hbm [shape: f32[16,128], index: 5, kind: output, shape index: {}]  }
   0x1   :  { %1391 = sst [smem:[#allocation18_spill]] %s1380_s1 }
   0x2   :  { %10 = vsyncpa [#allocation7], 0 }
   0x3   :  { %12 = vsyncpa [#allocation7 + $0x1], 0 }
   0x4   :  { %13 = vsyncpa [#allocation10], 0 }
   0x5   :  { %14 = vsyncpa [#allocation8], 0 }
   0x6   :  { %16 = vsyncpa [#allocation8 + $0x1], 0  ;;  %s1104_s18 = smov 0   ;;  %s1106_s19 = smov 0  }
   0x7   :  { %s1108_s20 = smov 0   ;;  %s1110_s21 = smov 0  }
   0x8   :  { %s1112_s22 = smov 0   ;;  %s1114_s23 = smov 0  }
   0x9   :  { %s1116_s24 = smov 0   ;;  %s1118_s25 = smov 0  }
   0xa LB: > { %1392 = sst [smem:[#allocation16_spill]] %s1029_s18  ;;  %s679_s26 = sadd.s32 4294967295, %s1057_s25   ;;  %s1057_s25 = sphi %s1118_s25, %s22_s25   ;;  %s1053_s24 = sphi %s1116_s24, %s1417_s24   ;;  %s1049_s23 = sphi %s1114_s23, %s1416_s23   ;;  %s1045_s22 = sphi %s1112_s22, %s1415_s22   ;;  %s1041_s21 = sphi %s1110_s21, %s1414_s21   ;;  %s1037_s20 = sphi %s1108_s20, %s1413_s20   ;;  %s1033_s19 = sphi %s1106_s19, %s1412_s19   ;;  %s1029_s18 = sphi %s1104_s18, %s1411_s18  }
   0xb   : > { %s680_s27 = sadd.s32 4294967294, %s1057_s25   ;;  %p61_p0 = scmp.ne.s32.totalorder %s1033_s19, %s1029_s18 }
   0xc   : > { %p1148_p1 = scmp.eq.s32.totalorder %s679_s26, 0  ;;  %p1152_p2 = scmp.eq.s32.totalorder %s679_s26, 3 }
   0xd   : > { %p189_p3 = scmp.eq.s32.totalorder %s680_s27, 3  ;;  %p681_p5 = scmp.ge.s32.totalorder %s1057_s25, 1 }
   0xe   : > { %s1393_s28 = scalar_select %p1148_p1, 1, 0 }
   0xf   : > { %s1394_s29 = scalar_select %p1152_p2, 1, 0 }
  0x10   : > { %p1158_p4 = por %p1148_p1, %p61_p0  ;;  %p1163_p6 = por %p189_p3, %p61_p0 }
  0x11   : > { %p196_p7 = scmp.lt.s32.totalorder %s1057_s25, 5  ;;  %s1059_s8 = smov [#allocation9]  }
  0x12   : > { %s1395_s30 = scalar_select %p1158_p4, 1, 0 }
  0x13   : > { %s1396_s6 = scalar_select %p1163_p6, 1, 0 }
  0x14   : > { %p1168_p8 = pnand %p681_p5, %p196_p7  ;;  %s208_s9 = sshll.u32 %s1059_s8, 4  ;;  %s209_s9 = int_to_ptr.vmem [resolvable:$true] %s208_s9 }
  0x15   : > { %1397 = sst [smem:[#allocation17_spill]] %s1396_s6  ;;  %s1060_s11 = smov [#allocation11]  }
  0x16   : > { %s1398_s7 = scalar_select %p1168_p8, 1, 0 }
  0x17   : > { %p763_p9 = pneg %p1168_p8  ;;  %s226_s12 = sshll.u32 %s1060_s11, 4  ;;  %s1180_s12 = int_to_ptr.vmem [resolvable:$true] %s226_s12 }
  0x18   : > { %s1400_s1 = sld [smem:[#allocation18_spill]] }
  0x19   : > { %p1176_p10 = pnand %p763_p9, %p1148_p1 }
  0x1b   : > { %p871_p12 = pneg %p1176_p10 }
  0x1e   : > { %s869_s15 = scalar_lea.hbm %s1400_s1, 512 }
  0x1f   : > { %p870_p11 = scmp.ne.s32.totalorder %s1400_s1, %s869_s15  ;;  %p876_p3 = scmp.lt.u32.totalorder %s869_s15, %s1400_s1 }
  0x21   : > { %p872_p13 = pnand %p871_p12, %p870_p11 }
  0x23   : > { %p873_p0 = pneg %p872_p13 }
  0x25   : > { %p878_p5 = pnand %p876_p3, %p873_p0 }
  0x27   : > { %881 = shalt.err (!%p878_p5)
}
  0x28   : > { %s882_s8 = scalar_lea.vmem %s209_s9, 512  ;;  %p890_p1 = scmp.lt.s32.totalorder %s209_s9, %s209_s9 }
  0x29   : > { %p883_p7 = scmp.ne.s32.totalorder %s209_s9, %s882_s8  ;;  %p891_p4 = scmp.lt.s32.totalorder %s882_s8, %s882_s8 }
  0x2b   : > { %p885_p9 = pnand %p883_p7, %p871_p12  ;;  %p892_p8 = por %p891_p4, %p890_p1 }
  0x2d   : > { %p886_p6 = pneg %p885_p9 }
  0x2f   : > { %p893_p2 = pnand %p892_p8, %p886_p6 }
  0x31   : > { %896 = shalt.err (!%p893_p2)
}
  0x32   : > { %s1061_s11 = smov 128   ;;  %s1062_s13 = smov 8  }
  0x33   : > { %766 = dma.hbm_to_vmem [thread:$0]  (!%p1176_p10), %s1400_s1, 512, %s209_s9, [#allocation10], %s1061_s11, %s1061_s11, %s1062_s13  }
  0x34   : > { %s897_s26 = scalar_lea.hbm %s1382_s3, 512 }
  0x35   : > { %p898_p11 = scmp.ne.s32.totalorder %s1382_s3, %s897_s26  ;;  %p904_p4 = scmp.lt.u32.totalorder %s897_s26, %s1382_s3 }
  0x37   : > { %p900_p1 = pnand %p898_p11, %p871_p12 }
  0x39   : > { %p901_p2 = pneg %p900_p1 }
  0x3b   : > { %p906_p6 = pnand %p904_p4, %p901_p2 }
  0x3d   : > { %909 = shalt.err (!%p906_p6)
}
  0x3e   : > { %s910_s9 = scalar_lea.vmem %s1180_s12, 512  ;;  %p918_p3 = scmp.lt.s32.totalorder %s1180_s12, %s1180_s12 }
  0x3f   : > { %p911_p8 = scmp.ne.s32.totalorder %s1180_s12, %s910_s9  ;;  %p919_p5 = scmp.lt.s32.totalorder %s910_s9, %s910_s9 }
  0x41   : > { %p913_p13 = pnand %p911_p8, %p871_p12  ;;  %p920_p7 = por %p919_p5, %p918_p3 }
  0x43   : > { %p914_p0 = pneg %p913_p13 }
  0x45   : > { %p921_p9 = pnand %p920_p7, %p914_p0 }
  0x47   : > { %924 = shalt.err (!%p921_p9)
}
  0x48   : > { %769 = dma.hbm_to_vmem [thread:$0]  (!%p1176_p10), %s1382_s3, 512, %s1180_s12, [#allocation10], %s1061_s11, %s1061_s11, %s1062_s13  }
  0x49   : > { %s37_s14 = sadd.s32 1, %s1049_s23  ;;  %s41_s15 = sadd.s32 1, %s1053_s24 }
  0x4a   : > { %p39_p12 = scmp.ge.s32.totalorder %s37_s14, 2  ;;  %s48_s10 = sadd.s32 1, %s1037_s20 }
  0x4b   : > { %p55_p11 = scmp.ne.s32.totalorder %s1037_s20, %s1033_s19  ;;  %p56_p1 = scmp.eq.s32.totalorder %s1057_s25, 0 }
  0x4c   : > { %s1419_s14 = smov (%p39_p12, %s37_s14), 0  ;;  %s1421_s15 = smov (!%p39_p12, %s41_s15), %s1053_s24 }
  0x4d   : > { %p1238_p2 = por %p56_p1, %p55_p11  ;;  %p1402_p4 = scmp.ne.s32.totalorder %s1394_s29, 0 }
  0x4e   : > { %p43_p10 = scmp.ge.s32.totalorder %s1421_s15, 2  ;;  %p780_p8 = scmp.lt.s32.totalorder %s1057_s25, 4 }
  0x4f   : > { %p1244_p6 = por %p1402_p4, %p55_p11  ;;  %s246_s12 = sand.u32 1, %s1037_s20  }
  0x50   : > { %s687_s11 = sshll.u32 %s1053_s24, 7  ;;  %s1423_s15 = smov (%p43_p10, %s1421_s15), 0 }
  0x51   : > { %s686_s13 = sshll.u32 %s246_s12, 3  ;;  %s45_s26 = ssub.s32 %s1053_s24, %s1423_s15 }
  0x52   : > { %p46_p13 = scmp.eq.s32.totalorder %s45_s26, 0  ;;  %s1258_s9 = scalar_lea.hbm %s1379_s0, %s687_s11 }
  0x53   : > { %s250_s29 = scalar_lea.vmem [#allocation6], %s686_s13  ;;  %p1262_p0 = pnand %p780_p8, %p1238_p2 }
  0x54   : > { %s257_s18 = sshll.u32 %s250_s29, 4  ;;  %s247_s26 = scalar_lea.sflag [#allocation7], %s246_s12  ;;  %s1269_s18 = int_to_ptr.vmem [resolvable:$true] %s257_s18 }
  0x55   : > { %s1267_s1 = scalar_select %p46_p13, %s1037_s20, %s48_s10  }
  0x56   : > { %s925_s11 = scalar_lea.hbm %s1258_s9, 128  ;;  %p927_p5 = pneg %p1262_p0 }
  0x57   : > { %p926_p3 = scmp.ne.s32.totalorder %s1258_s9, %s925_s11  ;;  %s930_s27 = scalar_lea.hbm %s1379_s0, 256 }
  0x58   : > { %p931_p12 = scmp.lt.u32.totalorder %s1258_s9, %s1379_s0  ;;  %p932_p11 = scmp.lt.u32.totalorder %s930_s27, %s925_s11 }
  0x59   : > { %p928_p7 = pnand %p927_p5, %p926_p3  ;;  %p934_p2 = scmp.lt.u32.totalorder %s925_s11, %s1258_s9 }
  0x5a   : > { %p933_p1 = por %p932_p11, %p931_p12 }
  0x5b   : > { %p929_p9 = pneg %p928_p7 }
  0x5c   : > { %p935_p4 = por %p934_p2, %p933_p1 }
  0x5e   : > { %p936_p10 = pnand %p935_p4, %p929_p9 }
  0x60   : > { %939 = shalt.err (!%p936_p10)
}
  0x61   : > { %s940_s10 = scalar_lea.vmem %s1269_s18, 128  ;;  %s1063_s12 = smov [#allocation6]  }
  0x62   : > { %p941_p8 = scmp.ne.s32.totalorder %s1269_s18, %s940_s10  ;;  %s945_s16 = sshll.u32 %s1063_s12, 4  ;;  %s946_s16 = int_to_ptr.vmem [resolvable:$false] %s945_s16 }
  0x63   : > { %s947_s13 = scalar_lea.vmem %s946_s16, 256  ;;  %p948_p7 = scmp.lt.s32.totalorder %s1269_s18, %s946_s16 }
  0x64   : > { %p943_p13 = pnand %p941_p8, %p927_p5  ;;  %p949_p12 = scmp.lt.s32.totalorder %s947_s13, %s940_s10 }
  0x66   : > { %p944_p3 = pneg %p943_p13  ;;  %p950_p11 = por %p949_p12, %p948_p7 }
  0x68   : > { %p951_p1 = pnand %p950_p11, %p944_p3 }
  0x6a   : > { %954 = shalt.err (!%p951_p1)
}
  0x6b   : > { %773 = dma.hbm_to_vmem [thread:$0]  (!%p1262_p0), %s1258_s9, 128, %s1269_s18, %s247_s26  }
  0x6c   : > { %p1405_p9 = scmp.ne.s32.totalorder %s1398_s7, 0 }
  0x6d   : > { %s1299_s11 = sand.u32 (!%p1405_p9), 1, %s1033_s19   ;;  %p1406_p5 = scmp.ne.s32.totalorder (!%p1405_p9), %s1395_s30, 0 }
  0x6e   : > { %266 = sbr.rel (%p1405_p9) target bundleno = 1188 (0x4a4), region = 40  ;;  %s689_s27 = sshll.u32 (!%p1405_p9), %s1299_s11, 3 }
  0x6f   : > { %s269_s8 = scalar_lea.sflag (!%p1405_p9), [#allocation7], %s1299_s11  ;;  %s272_s29 = scalar_lea.vmem (!%p1405_p9), [#allocation6], %s689_s27 }
  0x75   : > { %1016 = dma.done.wait (%p1406_p5), %s269_s8, 128  }
  0x76   : > { %1018 = vsyncadd (%p1406_p5), %s269_s8, 4294967168  ;;  %p1407_p2 = scmp.ne.s32.totalorder %s1393_s28, 0 }
  0x78   : > { %1020 = dma.done.wait (%p1407_p2), [#allocation10], 1024  }
  0x79   : > { %1022 = vsyncadd (%p1407_p2), [#allocation10], 4294966272  ;;  %p314_p0 = scmp.eq.s32.totalorder %s1041_s21, 0  ;;  %s1312_s7 = scalar_lea.vmem [#allocation12], %s689_s27 }
  0x7a   : > { %v321_v0 = vld [vmem:[#allocation9] sm:$0xff] (%p314_p0)  ;;  %v322_v1 = vld [vmem:[#allocation9 + $0x8] sm:$0xff] (%p314_p0)  ;;  %v323_v2 = vld [vmem:[#allocation9 + $0x10] sm:$0xff] (%p314_p0)  ;;  %v1064_v3 = vmov (%p314_p0), 0.0|0.0   ;;  %vm1065_vm0 = vmmov (%p314_p0), 0   ;;  %v1066_v6 = vmov (%p314_p0), 0.0  }
  0x7b   : > { %319 = sbr.rel (!%p314_p0) target bundleno = 347 (0x15b), region = 56  ;;  %739 = vmatprep.subr.bf16.mxu0 (%p314_p0), %v1064_v3  ;;  %v740_v4 = vpack.c.bf16 (%p314_p0), %v322_v1, %v321_v0  ;;  %v324_v5 = vld [vmem:[#allocation9 + $0x18] sm:$0xff] (%p314_p0)  ;;  %725 = vmatprep.mubr.msk.f32.mxu0 (%p314_p0), %vm1065_vm0, %v1066_v6  ;;  %vm407_vm1 = vcmask (%p314_p0), 7168   ;;  %v1067_v7 = vmov (%p314_p0), -inf   ;;  %vm332_vm2 = vcmask (%p314_p0), 261120  }
  0x7c   : > { %408 = vst.msk [vmem:[#allocation3] sm:$0xff] (%p314_p0), %vm407_vm1, %v1067_v7  ;;  %409 = vst.msk [vmem:[#allocation4] sm:$0xff] (%p314_p0), %vm407_vm1, %v1066_v6  ;;  %v743_v8 = vpack.c.bf16 (%p314_p0), %v324_v5, %v323_v2  ;;  %v320_v9 = vld [vmem:[%s272_s29] sm:$0xff] (%p314_p0) }
  0x7d   : > { %741 = vmatpush3.bf16.msra.mxu0 (%p314_p0), %v740_v4  ;;  %v694_v10 = vld [vmem:[%s1381_s2] ss:$0 sm:$0xff] (%p314_p0) }
  0x7e   : > { %742 = vmatprep.subr.bf16.mxu0 (%p314_p0), %v1064_v3 }
  0x81   : > { %744 = vmatpush3.bf16.msra.mxu0 (%p314_p0), %v743_v8 }
  0x84   : > { %726 = vmatmul.mubr.msk.f32.vlgmr.msra.gmra.mrb[0].mxu0 %vm332_vm2, %v320_v9 }
 0x157   : > { %v402_v11 = vpop.f32.mrb[0].mxu0 }
 0x158   : > { %v403_v12 = vadd.f32 %v694_v10, %v402_v11  ;;  %v727_v13 = vpop.f32.mrb[1].mxu0 }
 0x15a   : > { %406 = vst.msk [vmem:[#allocation2] sm:$0xff] %vm332_vm2, %v403_v12 }
 0x15b PF: > { %v411_v14 = vld [vmem:[#allocation11] sm:$0xff]  ;;  %v412_v15 = vld [vmem:[#allocation11 + $0x8] sm:$0xff]  ;;  %v413_v16 = vld [vmem:[#allocation11 + $0x10] sm:$0xff]  ;;  %v1068_v17 = vmov 0.0|0.0   ;;  %vm1069_vm3 = vmmov 0   ;;  %v1070_v20 = vmov 0.0  }
 0x15c   : > { %745 = vmatprep.subr.bf16.mxu0 %v1068_v17  ;;  %v746_v18 = vpack.c.bf16 %v412_v15, %v411_v14  ;;  %v414_v19 = vld [vmem:[#allocation11 + $0x18] sm:$0xff]  ;;  %736 = vmatprep.mubr.msk.f32.mxu0 %vm1069_vm3, %v1070_v20  ;;  %vm422_vm4 = vcmask 261120   ;;  %v696_v23 = vld [vmem:[%s1383_s4] ss:$0 sm:$0xff]  ;;  %p698_p4 = scmp.ne.s32.totalorder %s1041_s21, 0 }
 0x15d   : > { %v749_v21 = vpack.c.bf16 %v414_v19, %v413_v16  ;;  %v1071_v27 = vmov (!%p698_p4), 0   ;;  %v499_v28 = vld [vmem:[#allocation3] sm:$0xff] (!%p698_p4)  ;;  %vm519_vm5 = vcmask (!%p698_p4), 7168   ;;  %v503_v38 = vld [vmem:[#allocation4] sm:$0xff] (!%p698_p4) }
 0x15e   : > { %747 = vmatpush3.bf16.msra.mxu0 %v746_v18  ;;  %861 = vset.pattern.permute.xlu0 (!%p698_p4), %v1071_v27 }
 0x15f   : > { %748 = vmatprep.subr.bf16.mxu0 %v1068_v17 }
 0x161   : > { %v410_v22 = vld [vmem:[#allocation2] sm:$0xff] }
 0x162   : > { %750 = vmatpush3.bf16.msra.mxu0 %v749_v21 }
 0x165   : > { %737 = vmatmul.mubr.msk.f32.vlgmr.msra.gmra.mrb[0].mxu0 %vm422_vm4, %v410_v22 }
 0x233   : > { %498 = sbr.rel (%p698_p4) target bundleno = 1003 (0x3eb), region = 60 }
 0x238   : > { %v492_v24 = vpop.f32.mrb[0].mxu0 }
 0x239   : > { %v493_v25 = vadd.f32 %v696_v23, %v492_v24  ;;  %v738_v26 = vpop.f32.mrb[1].mxu0 }
 0x23b   : > { %500 = vmax.xlane.f32.xlu0 %v493_v25 }
 0x2c8   : > { %v501_v29 = vpop.xlane.xlu0 %500 }
 0x2c9   : > { %v502_v30 = vmax.f32 %v499_v28, %v501_v29 }
 0x2cb   : > { %v504_v31 = vsub.f32 %v499_v28, %v502_v30  ;;  %521 = vst.msk [vmem:[#allocation3] sm:$0xff] %vm519_vm5, %v502_v30  ;;  %510 = vperm.xlu0 %861, %v502_v30  }
 0x2cd   : > { %v505_v36 = vmul.f32 1.442695, %v504_v31 }
 0x34a   : > { %v511_v32 = vpop.permute.xlu0 %510 }
 0x34b   : > { %v513_v33 = vsub.f32 %v493_v25, %v511_v32 }
 0x34d   : > { %v514_v34 = vmul.f32 1.442695, %v513_v33 }
 0x34f   : > { %862 = vpow2.f32 %v514_v34 }
 0x350   : > { %864 = vpow2.f32 %v505_v36 }
 0x359   : > { %v863_v35 = vpop.eup %862 }
 0x35a   : > { %516 = vadd.xlane.f32.xlu1 %v863_v35  ;;  %v865_v37 = vpop.eup %864 }
 0x35b   : > { %v507_v39 = vmul.f32 %v865_v37, %v503_v38 }
 0x3e7   : > { %v517_v40 = vpop.xlane.xlu1 %516 }
 0x3e8   : > { %v518_v41 = vadd.f32 %v517_v40, %v507_v39 }
 0x3ea   : > { %520 = vst.msk [vmem:[#allocation4] sm:$0xff] %vm519_vm5, %v518_v41 }
 0x3eb PF: > { %p522_p10 = scmp.eq.s32.totalorder %s1041_s21, 1 }
 0x3ec   : > { %v527_v44 = vld [vmem:[#allocation3] sm:$0xff] (%p522_p10)  ;;  %vm532_vm6 = vcmask (%p522_p10), 7168  }
 0x3ed   : > { %526 = sbr.rel (!%p522_p10) target bundleno = 1026 (0x402), region = 64 }
 0x3f1   : > { %v528_v42 = vld [vmem:[#allocation4] sm:$0xff] (%p522_p10) }
 0x3f2   : > { %866 = vlog2.f32 (%p522_p10), %v528_v42 }
 0x3fc   : > { %v867_v43 = vpop.eup %866 }
 0x3fd   : > { %v530_v45 = vmul.f32 0.6931472, %v867_v43 }
 0x3ff   : > { %v531_v46 = vadd.f32 %v530_v45, %v527_v44 }
 0x401   : > { %533 = vst.msk [vmem:[#allocation5] sm:$0xff] %vm532_vm6, %v531_v46 }
 0x402 PF: > { %p700_p8 = scmp.ne.s32.totalorder %s1041_s21, 1 }
 0x403   : > { %v1072_v48 = vmov (!%p700_p8), 0  }
 0x404   : > { %536 = sbr.rel (%p700_p8) target bundleno = 1164 (0x48c), region = 68  ;;  %868 = vset.pattern.permute.xlu0 (!%p700_p8), %v1072_v48 }
 0x408   : > { %v537_v47 = vld [vmem:[#allocation5] sm:$0xff] (!%p700_p8) }
 0x409   : > { %540 = vperm.xlu0 (!%p700_p8), %868, %v537_v47  }
 0x488   : > { %v541_v49 = vpop.permute.xlu0 %540 }
 0x489   : > { %v543_v50 = vsub.f32 %v493_v25, %v541_v49 }
 0x48b   : > { %544 = vst [vmem:[%s1312_s7] sm:$0xff] %v543_v50 }
 0x48c PF: > { %s702_s6 = sshll.u32 %s1045_s22, 7  ;;  %s561_s21 = sshll.u32 %s1312_s7, 4  ;;  %s562_s21 = int_to_ptr.vmem [resolvable:$true] %s561_s21 }
 0x48d   : > { %s1330_s12 = scalar_lea.hbm %s1384_s5, %s702_s6  ;;  %s546_s16 = scalar_lea.sflag [#allocation8], %s1299_s11 }
 0x48e   : > { %s955_s13 = scalar_lea.vmem %s562_s21, 128  ;;  %s1073_s27 = smov [#allocation12]  }
 0x48f   : > { %p956_p13 = scmp.ne.s32.totalorder %s562_s21, %s955_s13  ;;  %s959_s8 = sshll.u32 %s1073_s27, 4  ;;  %s960_s8 = int_to_ptr.vmem [resolvable:$false] %s959_s8 }
 0x490   : > { %s961_s29 = scalar_lea.vmem %s960_s8, 256  ;;  %p962_p12 = scmp.lt.s32.totalorder %s562_s21, %s960_s8 }
 0x491   : > { %p957_p3 = pnand %p956_p13, %p1244_p6  ;;  %p963_p11 = scmp.lt.s32.totalorder %s961_s29, %s955_s13 }
 0x493   : > { %p958_p7 = pneg %p957_p3  ;;  %p964_p1 = por %p963_p11, %p962_p12 }
 0x495   : > { %p965_p9 = pnand %p964_p1, %p958_p7 }
 0x497   : > { %968 = shalt.err (!%p965_p9)
}
 0x498   : > { %s969_s22 = scalar_lea.hbm %s1330_s12, 128  ;;  %s973_s28 = scalar_lea.hbm %s1384_s5, 256 }
 0x499   : > { %p970_p5 = scmp.ne.s32.totalorder %s1330_s12, %s969_s22  ;;  %p974_p4 = scmp.lt.u32.totalorder %s1330_s12, %s1384_s5 }
 0x49a   : > { %p975_p10 = scmp.lt.u32.totalorder %s973_s28, %s969_s22  ;;  %p977_p13 = scmp.lt.u32.totalorder %s969_s22, %s1330_s12 }
 0x49b   : > { %p971_p2 = pnand %p970_p5, %p1244_p6 }
 0x49c   : > { %p976_p8 = por %p975_p10, %p974_p4 }
 0x49d   : > { %p972_p0 = pneg %p971_p2 }
 0x49e   : > { %p978_p3 = por %p977_p13, %p976_p8 }
 0x4a0   : > { %p979_p7 = pnand %p978_p3, %p972_p0 }
 0x4a2   : > { %982 = shalt.err (!%p979_p7)
}
 0x4a3   : > { %761 = dma.vmem_to_hbm [thread:$0]  (%p1244_p6), %s562_s21, 128, %s1330_s12, %s546_s16  }
 0x4a4 PF: > { %s1408_s18 = sld [smem:[#allocation16_spill]]  ;;  %s1409_s6 = sld [smem:[#allocation17_spill]] }
 0x4a5   : > { %p783_p12 = scmp.ge.s32.totalorder %s1057_s25, 2 }
 0x4aa   : > { %s573_s26 = sand.u32 1, %s1408_s18   ;;  %p1410_p11 = scmp.ne.s32.totalorder %s1409_s6, 0 }
 0x4ab   : > { %s574_s10 = scalar_lea.sflag [#allocation8], %s573_s26 }
 0x4ac   : > { %p775_p1 = pnand %p783_p12, %p1410_p11 }
 0x4ae   : > { %1024 = dma.done.wait (!%p775_p1), %s574_s10, 128  }
 0x4af   : > { %1026 = vsyncadd (!%p775_p1), %s574_s10, 4294967168  ;;  %s22_s25 = sadd.s32 1, %s1057_s25   ;;  %s1411_s18 = smov %s1033_s19 }
 0x4b0   : > { %p19_p9 = scmp.ge.s32.totalorder %s22_s25, 6   ;;  %s1412_s19 = smov %s1037_s20 }
 0x4b1   : > { %s1413_s20 = smov %s1267_s1  ;;  %s1414_s21 = smov %s1049_s23 }
 0x4b2   : > { %s1415_s22 = smov %s1053_s24  ;;  %s1416_s23 = smov %s1419_s14 }
 0x4b3   : > { %s1417_s24 = smov %s1423_s15  ;;  %21 = sbr.rel (!%p19_p9) target bundleno = 10 (0xa), region = 113 }
 0x4ba   :  { %579 = vsyncpa [#allocation7], 1 }
 0x4bb   :  { %581 = vsyncpa [#allocation7 + $0x1], 1 }
 0x4bc   :  { %582 = vsyncpa [#allocation10], 1 }
 0x4bd   :  { %583 = vsyncpa [#allocation8], 1 }
 0x4be   :  { %585 = vsyncpa [#allocation8 + $0x1], 1 }

</bundles_post_ra>
